<compile_context>
chip_gen: v5e
topology: v5e:2x2
jax: 0.10.0
libtpu: 0.0.40
codegen_flags: <defaults>
</compile_context>

<pallas_src>
import math
from functools import partial

import jax
import jax.numpy as jnp
from jax.experimental import pallas as pl
from jax.experimental.pallas import tpu as pltpu

EPS = 1e-8                     # eps inside hrr.unit_projection
_VMEM_LIMIT = 64 * 1024 * 1024


# ----------------------------------------------------------------------------
# Kernel A: fused q/k/v projection  y = x @ [Wq | Wk | Wv] + [bq | bk | bv]
# ----------------------------------------------------------------------------
def _qkv_proj_kernel(x_ref, w_ref, b_ref, o_ref):
    y = jnp.dot(x_ref[...], w_ref[...], preferred_element_type=jnp.float32)
    o_ref[...] = (y + b_ref[...]).astype(o_ref.dtype)


def qkv_projections(x2d, w_fused, b_fused, *, out_dtype):
    BS, D = x2d.shape
    D3 = w_fused.shape[1]
    TM = BS if BS <= 512 else 512            # row tile; full array at small sizes
    return pl.pallas_call(
        _qkv_proj_kernel,
        out_shape=jax.ShapeDtypeStruct((BS, D3), out_dtype),
        grid=(pl.cdiv(BS, TM),),
        in_specs=[
            pl.BlockSpec((TM, D), lambda m: (m, 0)),
            pl.BlockSpec((D, D3), lambda m: (0, 0)),
            pl.BlockSpec((1, D3), lambda m: (0, 0)),
        ],
        out_specs=pl.BlockSpec((TM, D3), lambda m: (m, 0)),
        compiler_params=pltpu.CompilerParams(
            dimension_semantics=("parallel",),
            vmem_limit_bytes=_VMEM_LIMIT,
        ),
    )(x2d, w_fused, b_fused)


# ----------------------------------------------------------------------------
# Kernel B: HRR attention, frequency domain end-to-end.
#   Per grid step (batch b, seq chunk sc) on a (Ts, 3D) tile holding all heads:
#     spectra = tile @ Ffwd            (block-diagonal per-head real DFT, [re | im])
#     unit-normalise q,k,v spectra     (f32, EUP reciprocal)
#     bind(k,v) = complex product      (pointwise)
#     causal cumsum = carry + tril_chunk @ xk_hat   (carry = f32 VMEM scratch)
#     unbind = multiply by conj(q_hat) (pointwise)
#     out = spectra @ Finv             (single inverse real DFT)
# ----------------------------------------------------------------------------
def _hrr_attn_kernel(qkv_ref, ffwd_ref, finv_ref, tril_ref, o_ref, carry_ref, *,
                     D, unit, approx_recip):
    sc = pl.program_id(1)

    @pl.when(sc == 0)
    def _():
        carry_ref[...] = jnp.zeros_like(carry_ref)

    blk = qkv_ref[0]                 # (Ts, 3D): [q | k | v], all heads
    ffwd = ffwd_ref[...]             # (D, 2D)  block-diag per-head [cos | -sin]
    finv = finv_ref[...]             # (2D, D)  block-diag per-head [cos ; -sin] / head_dims
    tri = tril_ref[...]              # (Ts, Ts) lower-triangular ones (or all-ones if not causal)

    def dft(a):                      # (Ts, D) -> (re, im), each (Ts, D) f32
        s = jnp.dot(a, ffwd, preferred_element_type=jnp.float32)
        return s[:, :D], s[:, D:]

    def unit_norm(re, im):           # unit-magnitude projection in the frequency domain
        mag = jnp.sqrt(re * re + im * im)
        inv = pl.reciprocal(mag + EPS, approx=approx_recip)
        return re * inv, im * inv

    qr, qi = dft(blk[:, :D])
    kr, ki = dft(blk[:, D:2 * D])
    vr, vi = dft(blk[:, 2 * D:])
    if unit:
        qr, qi = unit_norm(qr, qi)
        kr, ki = unit_norm(kr, ki)
        vr, vi = unit_norm(vr, vi)

    # hrr.bind(k, v): complex pointwise product (circular convolution in time domain)
    xk = jnp.concatenate([kr * vr - ki * vi, kr * vi + ki * vr], axis=1)     # (Ts, 2D) f32

    # causal cumulative sum over the sequence: intra-chunk tril matmul + running carry
    s_local = jnp.dot(tri, xk.astype(tri.dtype), preferred_element_type=jnp.float32)
    s_hat = s_local + carry_ref[...]
    carry_ref[...] = s_hat[-1:, :]   # last tril row is all ones -> running column sum

    # hrr.unbind(s, q): multiply by conj(q_hat); then a single inverse real DFT
    sr, si = s_hat[:, :D], s_hat[:, D:]
    u = jnp.concatenate([sr * qr + si * qi, si * qr - sr * qi], axis=1)      # (Ts, 2D)
    o_ref[0] = jnp.dot(u.astype(finv.dtype), finv,
                       preferred_element_type=jnp.float32).astype(o_ref.dtype)


def hrr_attention(qkv, ffwd, finv, tril_chunk, *, S, Ts, unit, approx_recip):
    B = qkv.shape[0]
    D = qkv.shape[-1] // 3
    kernel = partial(_hrr_attn_kernel, D=D, unit=unit, approx_recip=approx_recip)
    return pl.pallas_call(
        kernel,
        out_shape=jax.ShapeDtypeStruct((B, S, D), jnp.float32),
        grid=(B, S // Ts),
        in_specs=[
            pl.BlockSpec((1, Ts, 3 * D), lambda b, sc: (b, sc, 0)),
            pl.BlockSpec((D, 2 * D), lambda b, sc: (0, 0)),
            pl.BlockSpec((2 * D, D), lambda b, sc: (0, 0)),
            pl.BlockSpec((Ts, Ts), lambda b, sc: (0, 0)),
        ],
        out_specs=pl.BlockSpec((1, Ts, D), lambda b, sc: (b, sc, 0)),
        scratch_shapes=[pltpu.VMEM((1, 2 * D), jnp.float32)],
        compiler_params=pltpu.CompilerParams(
            dimension_semantics=("parallel", "arbitrary"),
            vmem_limit_bytes=_VMEM_LIMIT,
        ),
    )(qkv, ffwd, finv, tril_chunk)


# ----------------------------------------------------------------------------
# Module forward (glue in plain JAX; no transposes / head splits touch HBM)
# ----------------------------------------------------------------------------
def holographic_qkv(x, params, heads, causal=True, unit=True, fast=True):
    B, S, D = x.shape
    assert D % heads == 0
    Hd = D // heads

    # TODO(synk): HRRBernoulliSampler (self.filter_symbols) source is not part of the
    # provided module; treated as identity here.
    x_f = x

    mm_dtype = jnp.bfloat16 if fast else jnp.float32

    w, b = params["w"], params["b"]                      # (3, D, D) pre-transposed, (3, D)
    w_fused = jnp.concatenate([w[0], w[1], w[2]], axis=1).astype(mm_dtype)   # (D, 3D)
    b_fused = b.reshape(1, 3 * D).astype(jnp.float32)

    x2d = x_f.reshape(B * S, D).astype(mm_dtype)
    qkv = qkv_projections(x2d, w_fused, b_fused, out_dtype=mm_dtype)          # (B*S, 3D)
    qkv = qkv.reshape(B, S, 3 * D)

    # block-diagonal (per-head) real-DFT matrices for the head dimension
    n = jnp.arange(Hd, dtype=jnp.float32)
    ang = 2.0 * math.pi * jnp.outer(n, n) / Hd
    eye_h = jnp.eye(heads, dtype=jnp.float32)
    cmat = jnp.kron(eye_h, jnp.cos(ang))                 # (D, D)
    smat = jnp.kron(eye_h, jnp.sin(ang))                 # (D, D)
    ffwd = jnp.concatenate([cmat, -smat], axis=1).astype(mm_dtype)            # (D, 2D)
    finv = (jnp.concatenate([cmat, -smat], axis=0) / Hd).astype(mm_dtype)     # (2D, D)

    if causal:
        Ts = S if S <= 256 else 256
        assert S % Ts == 0   # TODO(synk): ragged final seq chunk not handled
        tril_chunk = jnp.tril(jnp.ones((Ts, Ts), jnp.float32))
    else:
        Ts = S               # non-causal sum needs the whole sequence in one chunk
        tril_chunk = jnp.ones((Ts, Ts), jnp.float32)
    tril_chunk = tril_chunk.astype(mm_dtype)

    return hrr_attention(qkv, ffwd, finv, tril_chunk,
                         S=S, Ts=Ts, unit=unit, approx_recip=fast)            # (B, S, D)


# ----------------------------------------------------------------------------
# Pure-JAX reference (jnp.fft) for correctness check
# ----------------------------------------------------------------------------
def reference(x, params, heads, causal=True, unit=True):
    B, S, D = x.shape
    Hd = D // heads
    w, b = params["w"], params["b"]
    x2d = x.reshape(B * S, D)
    q, k, v = (x2d @ w[i] + b[i] for i in range(3))
    q, k, v = (z.reshape(B, S, heads, Hd) for z in (q, k, v))

    def unit_proj(a):
        f = jnp.fft.fft(a, axis=-1)
        f = f / (jnp.abs(f) + EPS)
        return jnp.real(jnp.fft.ifft(f, axis=-1))

    def bind(a, bb):
        return jnp.real(jnp.fft.ifft(jnp.fft.fft(a) * jnp.fft.fft(bb)))

    def unbind(s, a):
        return jnp.real(jnp.fft.ifft(jnp.fft.fft(s) * jnp.conj(jnp.fft.fft(a))))

    if unit:
        q, k, v = map(unit_proj, (q, k, v))
    xk = bind(k, v)
    s = jnp.cumsum(xk, axis=1) if causal else jnp.sum(xk, axis=1, keepdims=True)
    return unbind(s, q).reshape(B, S, D)


if __name__ == "__main__":
    B, S, D, H = 2, 8, 32, 4                      # batch, seq, dims, heads (head_dims = 8)

    key = jax.random.PRNGKey(0)
    kx, kq, kk, kv = jax.random.split(key, 4)
    x = jax.random.normal(kx, (B, S, D), dtype=jnp.float32)

    # Deterministic init mirroring the module: xavier_uniform (gain=1), zero bias.
    # Weights stored pre-transposed, i.e. (in, out) so that y = x @ w + b.
    limit = math.sqrt(6.0 / (D + D))
    w = jnp.stack([jax.random.uniform(kk_, (D, D), jnp.float32, -limit, limit)
                   for kk_ in (kq, kk, kv)])      # (3, D, D)
    b = jnp.zeros((3, D), jnp.float32)
    params = {"w": w, "b": b}

    ref = reference(x, params, heads=H, causal=True, unit=True)

    # Exact path (f32 MXU, exact reciprocal): tight correctness check.
    out_exact = jax.block_until_ready(
        holographic_qkv(x, params, heads=H, causal=True, unit=True, fast=False))
    assert out_exact.shape == (B, S, D), out_exact.shape
    assert jnp.allclose(out_exact, ref, rtol=2e-3, atol=2e-3), \
        f"f32 max abs err = {float(jnp.max(jnp.abs(out_exact - ref)))}"

    # Fast path (bf16 MXU operands, f32 accumulate, EUP approx reciprocal): loose check
    # (bf16 rounding through several matmul stages + S-term causal accumulation).
    out_fast = jax.block_until_ready(
        holographic_qkv(x, params, heads=H, causal=True, unit=True, fast=True))
    assert out_fast.shape == (B, S, D), out_fast.shape
    assert jnp.allclose(out_fast, ref, rtol=1e-1, atol=1e-1), \
        f"bf16 max abs err = {float(jnp.max(jnp.abs(out_fast - ref)))}"

    print("KERNEL_OK")
</pallas_src>

<mosaic_0001>
module attributes {stable_mosaic.version = 11 : i64} {
  func.func @_qkv_proj_kernel(%arg0: i32, %arg1: memref<16x32xf32, #tpu.memory_space<vmem>>, %arg2: memref<32x96xf32, #tpu.memory_space<vmem>>, %arg3: memref<1x96xf32, #tpu.memory_space<vmem>>, %arg4: memref<16x96xf32, #tpu.memory_space<vmem>>) attributes {dimension_semantics = [#tpu.dimension_semantics<parallel>], iteration_bounds = array<i64: 1>, scalar_prefetch = 0 : i64, scratch_operands = 0 : i64, tpu.core_type = #tpu.core_type<tc>, window_params = [{transform_indices = @transform_0, window_bounds = array<i64: 16, 32>}, {pipeline_mode = #tpu.pipeline_mode<synchronous>, transform_indices = @transform_1, window_bounds = array<i64: 32, 96>}, {pipeline_mode = #tpu.pipeline_mode<synchronous>, transform_indices = @transform_2, window_bounds = array<i64: 1, 96>}, {transform_indices = @transform_3, window_bounds = array<i64: 16, 96>}]} {
    %c0 = arith.constant 0 : index
    %c0_0 = arith.constant 0 : index
    %0 = vector.load %arg1[%c0, %c0_0] : memref<16x32xf32, #tpu.memory_space<vmem>>, vector<16x32xf32>
    %c0_1 = arith.constant 0 : index
    %c0_2 = arith.constant 0 : index
    %1 = vector.load %arg2[%c0_1, %c0_2] : memref<32x96xf32, #tpu.memory_space<vmem>>, vector<32x96xf32>
    %cst = arith.constant dense<0.000000e+00> : vector<16x96xf32>
    %2 = tpu.matmul %0, %1, %cst {dimension_numbers = #tpu.dot_dimension_numbers<[1], [0], [0], [1], [0, 0, 1, 1], [], []>} : vector<16x32xf32>, vector<32x96xf32>, vector<16x96xf32> -> vector<16x96xf32>
    %c0_3 = arith.constant 0 : index
    %c0_4 = arith.constant 0 : index
    %3 = vector.load %arg3[%c0_3, %c0_4] : memref<1x96xf32, #tpu.memory_space<vmem>>, vector<1x96xf32>
    %4 = vector.broadcast %3 : vector<1x96xf32> to vector<16x96xf32>
    %5 = arith.addf %2, %4 : vector<16x96xf32>
    %c0_5 = arith.constant 0 : index
    %c0_6 = arith.constant 0 : index
    %6 = vector.load %arg4[%c0_5, %c0_6] : memref<16x96xf32, #tpu.memory_space<vmem>>, vector<16x96xf32>
    tpu.vector_store %arg4[%c0_5, %c0_6], %5 {strides = array<i32>} : memref<16x96xf32, #tpu.memory_space<vmem>>, vector<16x96xf32>,
    return
  }
  func.func @transform_0(%arg0: i32) -> (i32, i32) {
    %c0_i32 = arith.constant 0 : i32
    %c0_i32_0 = arith.constant 0 : i32
    return %arg0, %c0_i32 : i32, i32
  }
  func.func @transform_1(%arg0: i32) -> (i32, i32) {
    %c0_i32 = arith.constant 0 : i32
    %c0_i32_0 = arith.constant 0 : i32
    %c0_i32_1 = arith.constant 0 : i32
    return %c0_i32, %c0_i32_0 : i32, i32
  }
  func.func @transform_2(%arg0: i32) -> (i32, i32) {
    %c0_i32 = arith.constant 0 : i32
    %c0_i32_0 = arith.constant 0 : i32
    %c0_i32_1 = arith.constant 0 : i32
    return %c0_i32, %c0_i32_0 : i32, i32
  }
  func.func @transform_3(%arg0: i32) -> (i32, i32) {
    %c0_i32 = arith.constant 0 : i32
    %c0_i32_0 = arith.constant 0 : i32
    return %arg0, %c0_i32 : i32, i32
  }
}

</mosaic_0001>

<bundles_post_ra>
// kernel: tpu_custom_call.1
= control target key start
LH: loop header
LB: loop body
LE: loop exit
PB: predicated region body
PF: predicated region fallthrough
CT: control target
= control target key end

     0   :  { %8 = vsyncpa [#allocation3], 0  ;;  %s246_s0 = inlined_call_operand.hbm [shape: f32[16,32], index: 0, kind: input, shape index: {}]   ;;  %s247_s1 = inlined_call_operand.hbm [shape: f32[32,96], index: 1, kind: input, shape index: {}]   ;;  %s248_s2 = inlined_call_operand.vmem [shape: f32[1,96], index: 2, kind: input, shape index: {}]   ;;  %s249_s3 = inlined_call_operand.hbm [shape: f32[16,96], index: 3, kind: output, shape index: {}]  }
   0x1   :  { %9 = vsyncpa [#allocation6], 0 }
   0x2   :  { %10 = vsyncpa [#allocation4], 0  ;;  %s15_s14 = sshll.u32 %s246_s0, 4  ;;  %s200_s15 = smov [#allocation2]   ;;  %s16_s14 = int_to_ptr.hbm [resolvable:$true] %s15_s14 }
   0x3   :  { %s17_s16 = sshll.u32 %s200_s15, 4  ;;  %s28_s19 = sshll.u32 %s247_s1, 4  ;;  %s18_s16 = int_to_ptr.vmem [resolvable:$true] %s17_s16  ;;  %s29_s19 = int_to_ptr.hbm [resolvable:$true] %s28_s19 }
   0x4   :  { %s201_s20 = smov 128   ;;  %s202_s21 = smov 8  }
   0x5   :  { %23 = dma.hbm_to_vmem [thread:$0]  %s16_s14, 256, %s18_s16, [#allocation3], %s201_s20, %s201_s20, %s202_s21  }
   0x6   :  { %s203_s22 = smov [#allocation5]  }
   0x7   :  { %s30_s23 = sshll.u32 %s203_s22, 4  ;;  %s31_s23 = int_to_ptr.vmem [resolvable:$true] %s30_s23 }
   0x8   :  { %36 = dma.hbm_to_vmem [thread:$0]  %s29_s19, 512, %s31_s23, [#allocation6], %s201_s20, %s201_s20, %s202_s21  }
   0x9   :  { %194 = dma.done.wait [#allocation3], 256  }
   0xa   :  { %195 = vsyncadd [#allocation3], 4294967040 }
   0xb   :  { %196 = dma.done.wait [#allocation6], 512  }
   0xc   :  { %197 = vsyncadd [#allocation6], 4294966784  ;;  %v52_v0 = vld [vmem:[#allocation5 + $0x18] sm:$0xff]  ;;  %v51_v1 = vld [vmem:[#allocation5 + $0x10] sm:$0xff]  ;;  %vm57_vm0 = vcmask 261120   ;;  %s204_s24 = smov [#allocation7]  }
   0xd   :  { %76 = vmatpush.msra.mxu0 %v52_v0  ;;  %112 = vmatpush.msra.mxu1 %v52_v0  ;;  %v50_v2 = vld [vmem:[#allocation5 + $0x8] sm:$0xff]  ;;  %v49_v3 = vld [vmem:[#allocation5] sm:$0xff]  ;;  %v47_v4 = vld [vmem:[#allocation2] sm:$0xff]  ;;  %s94_s25 = sshll.u32 %s204_s24, 4  ;;  %s96_s28 = sshll.u32 %s249_s3, 4  ;;  %vm87_vm1 = vcmask 785408   ;;  %s95_s25 = int_to_ptr.vmem [resolvable:$true] %s94_s25  ;;  %s97_s28 = int_to_ptr.hbm [resolvable:$true] %s96_s28 }
   0xe   :  { %v48_v5 = vld [vmem:[#allocation2 + $0x8] sm:$0xff]  ;;  %v121_v6 = vld [vmem:[%s248_s2] ss:$0 sm:$0xff] }
   0xf   :  { %77 = vmatpush.msra.mxu0 %v51_v1  ;;  %113 = vmatpush.msra.mxu1 %v51_v1 }
  0x11   :  { %78 = vmatpush.msra.mxu0 %v50_v2  ;;  %114 = vmatpush.msra.mxu1 %v50_v2 }
  0x13   :  { %79 = vmatpush.msra.mxu0 %v49_v3  ;;  %115 = vmatpush.msra.mxu1 %v49_v3 }
  0x14   :  { %110 = vmatmul.msk.f32.vlgmr.msra.gmra.mxu0 %vm57_vm0, %v47_v4  ;;  %111 = vmatmul.msk.f32.vlgmr.msra.gmra.mxu1 %vm57_vm0, %v48_v5 }
  0x91   :  { %v81_v7 = vpop.f32.mrf.mxu0  ;;  %v84_v8 = vpop.f32.mrf.mxu1 }
  0x92   :  { %v82_v9 = vadd.f32 %v121_v6, %v81_v7  ;;  %v85_v10 = vadd.f32 %v121_v6, %v84_v8 }
  0x94   :  { %88 = vst.msk [vmem:[#allocation7] sm:$0xff] %vm87_vm1, %v82_v9 }
  0x95   :  { %89 = vst.msk [vmem:[#allocation7 + $0x8] sm:$0xff] %vm87_vm1, %v85_v10 }
  0x96   :  { %102 = dma.vmem_to_hbm [thread:$0]  %s95_s25, 256, %s97_s28, [#allocation4], %s201_s20, %s201_s20, %s202_s21  }
  0x97   :  { %198 = dma.done.wait [#allocation4], 256  }
  0x98   :  { %199 = vsyncadd [#allocation4], 4294967040 }
  0x99   :  { %107 = vsyncpa [#allocation3], 1 }
  0x9a   :  { %108 = vsyncpa [#allocation6], 1 }
  0x9b   :  { %109 = vsyncpa [#allocation4], 1 }

</bundles_post_ra>
